<compile_context>
chip_gen: v7x
topology: tpu7x:2x2x1
jax: 0.10.0
libtpu: 0.0.40
codegen_flags: <defaults>
</compile_context>

<pallas_src>
import functools
import math

import jax
import jax.numpy as jnp
import numpy as np
from jax import lax
from jax.experimental import pallas as pl
from jax.experimental.pallas import tpu as pltpu


# ---------------------------------------------------------------------------
# Host-side constant builders (depend only on C, H, L, W, patch layout).
# ---------------------------------------------------------------------------
def _build_branch_consts(channel, heads, seq_len, win_size, col_of):
    """Selection/expansion constants for one attention branch.

    Row ordering inside a batch element is (c, l, h):  r = (c*L + l)*H + h.
    col_of maps an output position in [0, W) to its source index in [0, L).
    """
    C, H, L, W = channel, heads, seq_len, win_size
    GL = C * L * H
    WW = W * W

    r = np.arange(GL)
    c_r = r // (L * H)
    l_r = (r // H) % L
    h_r = r % H

    # 0/1 "block-diagonal" mask: a row only attends within its own (c, h) group.
    m = ((c_r[:, None] == c_r[None, :]) &
         (h_r[:, None] == h_r[None, :])).astype(np.float32)

    # Channel-mean row selector with 1/C folded in: (H*L, GL).
    hl = np.arange(H * L)
    sel_h = hl // L
    sel_l = hl % L
    lsel = ((h_r[None, :] == sel_h[:, None]) &
            (l_r[None, :] == sel_l[:, None])).astype(np.float32) / float(C)

    # Column expansion straight into the flattened (w, w') lane axis: (GL, WW).
    j = np.arange(WW)
    col_src = col_of(j % W)          # source attention column for output col w'
    rsel = (l_r[:, None] == col_src[None, :]).astype(np.float32)

    # Row-expansion select mask over the (H*L) axis: (H*L, WW).
    row_src = col_of(j // W)         # source attention row for output row w
    hsel = (sel_l[:, None] == row_src[None, :]).astype(np.float32)

    # Per-head reduction matrix (sums the L masked rows of each head): (H, H*L).
    red = (np.arange(H)[:, None] == sel_h[None, :]).astype(np.float32)

    return (jnp.asarray(m), jnp.asarray(lsel), jnp.asarray(rsel),
            jnp.asarray(hsel), jnp.asarray(red))


# ---------------------------------------------------------------------------
# Kernel: one grid step = one true batch element; both branches, all channels
# and heads handled with a handful of MXU matmuls + cheap VPU passes.
# ---------------------------------------------------------------------------
def _dac_kernel(q1_ref, k1_ref, q2_ref, k2_ref,
                m1_ref, lsel1_ref, rsel1_ref, hsel1_ref, red1_ref,
                m2_ref, lsel2_ref, rsel2_ref, hsel2_ref, red2_ref,
                o_ref, *, scale_ps, scale_pn):

    def branch(q_ref, k_ref, m_ref, lsel_ref, rsel_ref, hsel_ref, red_ref,
               scale):
        # q/k: (GL, E) with GL = C*L*H rows stacked in (c, l, h) order.
        q = q_ref[...] * scale                                   # fold scale
        s = lax.dot_general(q, k_ref[...], (((1,), (1,)), ((), ())),
                            preferred_element_type=jnp.float32)  # (GL, GL)

        # Softmax with the 0/1 group mask applied AFTER exp (exact by shift
        # invariance; the unmasked row max >= in-group max, so no overflow).
        mx = jnp.max(s, axis=-1, keepdims=True)
        e = jnp.exp(s - mx) * m_ref[...]
        denom = jnp.sum(e, axis=-1, keepdims=True)
        a = e * pl.reciprocal(denom, approx=False)               # (GL, GL)

        # Channel mean (1/C inside Lsel) + column expansion, both on the MXU.
        tmp = jnp.dot(lsel_ref[...], a,
                      preferred_element_type=jnp.float32)        # (H*L, GL)
        pexp = jnp.dot(tmp, rsel_ref[...],
                       preferred_element_type=jnp.float32)       # (H*L, WW)

        # Row expansion: per-column row select (mask) + per-head sum (MXU).
        sel = pexp * hsel_ref[...]                               # (H*L, WW)
        return jnp.dot(red_ref[...], sel,
                       preferred_element_type=jnp.float32)       # (H, WW)

    # patch_size branch: einops repeat -> out[w, w'] = A[w // p, w' // p]
    o_ref[0, :, :] = branch(q1_ref, k1_ref, m1_ref, lsel1_ref, rsel1_ref,
                            hsel1_ref, red1_ref, scale_ps)
    # patch_num branch: torch .repeat  -> out[w, w'] = A[w % L2, w' % L2]
    o_ref[1, :, :] = branch(q2_ref, k2_ref, m2_ref, lsel2_ref, rsel2_ref,
                            hsel2_ref, red2_ref, scale_pn)


# ---------------------------------------------------------------------------
# Wrapper
# ---------------------------------------------------------------------------
def dac_structure_forward(queries_patch_size, keys_patch_size,
                          queries_patch_num, keys_patch_num,
                          *, win_size, patch_size, patch_index, channel,
                          scale=None):
    """Pallas implementation of DAC_structure.forward (output_attention=True).

    Inputs follow the PyTorch layout: (B_true*channel, L, H, E).
    Returns (series_patch_size, series_patch_num), each (B_true, H, W, W).
    """
    B, L1, H, E1 = queries_patch_size.shape
    _, L2, _, E2 = queries_patch_num.shape
    assert B % channel == 0
    Bt = B // channel
    p = patch_size[patch_index]
    W = win_size
    WW = W * W
    assert L1 * p == W and L2 * (W // p) == W

    scale_ps = (1.0 / math.sqrt(E1)) if scale is None else scale
    scale_pn = (1.0 / math.sqrt(E2)) if scale is None else scale

    def to_rows(x):
        # (Bt*C, L, H, E) -> (Bt, C*L*H, E): pure reshape, row = (c, l, h).
        _, Lx, Hx, Ex = x.shape
        return x.reshape(Bt, channel * Lx * Hx, Ex).astype(jnp.float32)

    q1 = to_rows(queries_patch_size)
    k1 = to_rows(keys_patch_size)
    q2 = to_rows(queries_patch_num)
    k2 = to_rows(keys_patch_num)

    m1, lsel1, rsel1, hsel1, red1 = _build_branch_consts(
        channel, H, L1, W, lambda i: i // p)
    m2, lsel2, rsel2, hsel2, red2 = _build_branch_consts(
        channel, H, L2, W, lambda i: i % L2)

    GL1 = channel * L1 * H
    GL2 = channel * L2 * H

    def const_spec(shape):
        # Same block every grid step -> fetched once, not re-DMA'd per step.
        return pl.BlockSpec(shape, lambda b: (0, 0))

    kernel = functools.partial(_dac_kernel,
                               scale_ps=float(scale_ps),
                               scale_pn=float(scale_pn))

    out = pl.pallas_call(
        kernel,
        out_shape=jax.ShapeDtypeStruct((Bt, 2, H, WW), jnp.float32),
        grid=(Bt,),
        in_specs=[
            pl.BlockSpec((None, GL1, E1), lambda b: (b, 0, 0)),
            pl.BlockSpec((None, GL1, E1), lambda b: (b, 0, 0)),
            pl.BlockSpec((None, GL2, E2), lambda b: (b, 0, 0)),
            pl.BlockSpec((None, GL2, E2), lambda b: (b, 0, 0)),
            const_spec((GL1, GL1)),
            const_spec((H * L1, GL1)),
            const_spec((GL1, WW)),
            const_spec((H * L1, WW)),
            const_spec((H, H * L1)),
            const_spec((GL2, GL2)),
            const_spec((H * L2, GL2)),
            const_spec((GL2, WW)),
            const_spec((H * L2, WW)),
            const_spec((H, H * L2)),
        ],
        out_specs=pl.BlockSpec((None, 2, H, WW), lambda b: (b, 0, 0, 0)),
        compiler_params=pltpu.CompilerParams(
            dimension_semantics=("parallel",)),
    )(q1, k1, q2, k2,
      m1, lsel1, rsel1, hsel1, red1,
      m2, lsel2, rsel2, hsel2, red2)

    # Free wrapper-side split + reshape back to (Bt, H, W, W).
    series_ps = out[:, 0].reshape(Bt, H, W, W)
    series_pn = out[:, 1].reshape(Bt, H, W, W)
    return series_ps, series_pn


# ---------------------------------------------------------------------------
# Pure-JAX reference mirroring the PyTorch forward (eval mode).
# ---------------------------------------------------------------------------
def dac_structure_reference(queries_patch_size, keys_patch_size,
                            queries_patch_num, keys_patch_num,
                            *, win_size, patch_size, patch_index, channel,
                            scale=None):
    E1 = queries_patch_size.shape[-1]
    E2 = queries_patch_num.shape[-1]
    p = patch_size[patch_index]
    W = win_size
    sc1 = (1.0 / math.sqrt(E1)) if scale is None else scale
    sc2 = (1.0 / math.sqrt(E2)) if scale is None else scale

    s_ps = jnp.einsum('blhe,bshe->bhls', queries_patch_size, keys_patch_size)
    a_ps = jax.nn.softmax(sc1 * s_ps, axis=-1)
    s_pn = jnp.einsum('blhe,bshe->bhls', queries_patch_num, keys_patch_num)
    a_pn = jax.nn.softmax(sc2 * s_pn, axis=-1)

    a_ps = jnp.repeat(jnp.repeat(a_ps, p, axis=2), p, axis=3)
    a_pn = jnp.tile(a_pn, (1, 1, W // p, W // p))

    Bt = queries_patch_size.shape[0] // channel
    a_ps = a_ps.reshape(Bt, channel, *a_ps.shape[1:]).mean(axis=1)
    a_pn = a_pn.reshape(Bt, channel, *a_pn.shape[1:]).mean(axis=1)
    return a_ps, a_pn


if __name__ == "__main__":
    # Small shapes consistent with DCdetector's DAC structure.
    win_size = 16
    patch_size = (2, 4)
    patch_index = 0
    channel = 4
    Bt = 2          # true batch
    H = 2           # heads
    E = 16          # head dim
    p = patch_size[patch_index]
    B = Bt * channel
    L1 = win_size // p      # seq len of patch_size branch
    L2 = p                  # seq len of patch_num branch

    key = jax.random.PRNGKey(0)
    k1, k2, k3, k4, k5 = jax.random.split(key, 5)
    q_ps = jax.random.normal(k1, (B, L1, H, E), jnp.float32)
    k_ps = jax.random.normal(k2, (B, L1, H, E), jnp.float32)
    q_pn = jax.random.normal(k3, (B, L2, H, E), jnp.float32)
    k_pn = jax.random.normal(k4, (B, L2, H, E), jnp.float32)
    values = jax.random.normal(k5, (B, L1, H, E), jnp.float32)  # unused by forward
    attn_mask = None                                            # unused by forward

    out_ps, out_pn = dac_structure_forward(
        q_ps, k_ps, q_pn, k_pn,
        win_size=win_size, patch_size=patch_size,
        patch_index=patch_index, channel=channel)
    jax.block_until_ready((out_ps, out_pn))

    ref_ps, ref_pn = dac_structure_reference(
        q_ps, k_ps, q_pn, k_pn,
        win_size=win_size, patch_size=patch_size,
        patch_index=patch_index, channel=channel)

    assert out_ps.shape == (Bt, H, win_size, win_size)
    assert out_pn.shape == (Bt, H, win_size, win_size)
    np.testing.assert_allclose(np.asarray(out_ps), np.asarray(ref_ps),
                               rtol=1e-5, atol=1e-5)
    np.testing.assert_allclose(np.asarray(out_pn), np.asarray(ref_pn),
                               rtol=1e-5, atol=1e-5)
    print("KERNEL_OK")
</pallas_src>

<mosaic_0001>
module attributes {stable_mosaic.version = 11 : i64} {
  func.func @_dac_kernel(%arg0: i32, %arg1: memref<1x64x16xf32, #tpu.memory_space<vmem>>, %arg2: memref<1x64x16xf32, #tpu.memory_space<vmem>>, %arg3: memref<1x16x16xf32, #tpu.memory_space<vmem>>, %arg4: memref<1x16x16xf32, #tpu.memory_space<vmem>>, %arg5: memref<64x64xf32, #tpu.memory_space<vmem>>, %arg6: memref<16x64xf32, #tpu.memory_space<vmem>>, %arg7: memref<64x256xf32, #tpu.memory_space<vmem>>, %arg8: memref<16x256xf32, #tpu.memory_space<vmem>>, %arg9: memref<2x16xf32, #tpu.memory_space<vmem>>, %arg10: memref<16x16xf32, #tpu.memory_space<vmem>>, %arg11: memref<4x16xf32, #tpu.memory_space<vmem>>, %arg12: memref<16x256xf32, #tpu.memory_space<vmem>>, %arg13: memref<4x256xf32, #tpu.memory_space<vmem>>, %arg14: memref<2x4xf32, #tpu.memory_space<vmem>>, %arg15: memref<1x2x2x256xf32, #tpu.memory_space<vmem>>) attributes {dimension_semantics = [#tpu.dimension_semantics<parallel>], iteration_bounds = array<i64: 2>, scalar_prefetch = 0 : i64, scratch_operands = 0 : i64, tpu.core_type = #tpu.core_type<tc>, window_params = [{transform_indices = @transform_0, window_bounds = array<i64: 1, 64, 16>}, {transform_indices = @transform_1, window_bounds = array<i64: 1, 64, 16>}, {transform_indices = @transform_2, window_bounds = array<i64: 1, 16, 16>}, {transform_indices = @transform_3, window_bounds = array<i64: 1, 16, 16>}, {pipeline_mode = #tpu.pipeline_mode<synchronous>, transform_indices = @transform_4, window_bounds = array<i64: 64, 64>}, {pipeline_mode = #tpu.pipeline_mode<synchronous>, transform_indices = @transform_5, window_bounds = array<i64: 16, 64>}, {pipeline_mode = #tpu.pipeline_mode<synchronous>, transform_indices = @transform_6, window_bounds = array<i64: 64, 256>}, {pipeline_mode = #tpu.pipeline_mode<synchronous>, transform_indices = @transform_7, window_bounds = array<i64: 16, 256>}, {pipeline_mode = #tpu.pipeline_mode<synchronous>, transform_indices = @transform_8, window_bounds = array<i64: 2, 16>}, {pipeline_mode = #tpu.pipeline_mode<synchronous>, transform_indices = @transform_9, window_bounds = array<i64: 16, 16>}, {pipeline_mode = #tpu.pipeline_mode<synchronous>, transform_indices = @transform_10, window_bounds = array<i64: 4, 16>}, {pipeline_mode = #tpu.pipeline_mode<synchronous>, transform_indices = @transform_11, window_bounds = array<i64: 16, 256>}, {pipeline_mode = #tpu.pipeline_mode<synchronous>, transform_indices = @transform_12, window_bounds = array<i64: 4, 256>}, {pipeline_mode = #tpu.pipeline_mode<synchronous>, transform_indices = @transform_13, window_bounds = array<i64: 2, 4>}, {transform_indices = @transform_14, window_bounds = array<i64: 1, 2, 2, 256>}]} {
    %c0 = arith.constant 0 : index
    %c0_0 = arith.constant 0 : index
    %c0_1 = arith.constant 0 : index
    %0 = vector.load %arg1[%c0, %c0_0, %c0_1] : memref<1x64x16xf32, #tpu.memory_space<vmem>>, vector<1x64x16xf32>
    %1 = vector.shape_cast %0 : vector<1x64x16xf32> to vector<64x16xf32>
    %cst = arith.constant 2.500000e-01 : f32
    %2 = vector.broadcast %cst : f32 to vector<64x16xf32>
    %3 = arith.mulf %1, %2 : vector<64x16xf32>
    %c0_2 = arith.constant 0 : index
    %c0_3 = arith.constant 0 : index
    %c0_4 = arith.constant 0 : index
    %4 = vector.load %arg2[%c0_2, %c0_3, %c0_4] : memref<1x64x16xf32, #tpu.memory_space<vmem>>, vector<1x64x16xf32>
    %5 = vector.shape_cast %4 : vector<1x64x16xf32> to vector<64x16xf32>
    %cst_5 = arith.constant dense<0.000000e+00> : vector<64x64xf32>
    %6 = tpu.matmul %3, %5, %cst_5 {dimension_numbers = #tpu.dot_dimension_numbers<[1], [1], [0], [0], [0, 0, 1, 0], [], []>} : vector<64x16xf32>, vector<64x16xf32>, vector<64x64xf32> -> vector<64x64xf32>
    %cst_6 = arith.constant dense<0xFF800000> : vector<64xf32>
    %7 = vector.multi_reduction <maximumf>, %6, %cst_6 [1] : vector<64x64xf32> to vector<64xf32>
    %8 = vector.shape_cast %7 : vector<64xf32> to vector<64x1xf32>
    %9 = vector.broadcast %8 : vector<64x1xf32> to vector<64x64xf32>
    %10 = arith.subf %6, %9 : vector<64x64xf32>
    %11 = math.exp %10 : vector<64x64xf32>
    %c0_7 = arith.constant 0 : index
    %c0_8 = arith.constant 0 : index
    %12 = vector.load %arg5[%c0_7, %c0_8] : memref<64x64xf32, #tpu.memory_space<vmem>>, vector<64x64xf32>
    %13 = arith.mulf %11, %12 : vector<64x64xf32>
    %cst_9 = arith.constant dense<0.000000e+00> : vector<64xf32>
    %14 = vector.multi_reduction <add>, %13, %cst_9 [1] : vector<64x64xf32> to vector<64xf32>
    %15 = vector.shape_cast %14 : vector<64xf32> to vector<64x1xf32>
    %16 = tpu.reciprocal %15 : vector<64x1xf32> -> vector<64x1xf32>
    %17 = vector.broadcast %16 : vector<64x1xf32> to vector<64x64xf32>
    %18 = arith.mulf %13, %17 : vector<64x64xf32>
    %c0_10 = arith.constant 0 : index
    %c0_11 = arith.constant 0 : index
    %19 = vector.load %arg6[%c0_10, %c0_11] : memref<16x64xf32, #tpu.memory_space<vmem>>, vector<16x64xf32>
    %cst_12 = arith.constant dense<0.000000e+00> : vector<16x64xf32>
    %20 = tpu.matmul %19, %18, %cst_12 {dimension_numbers = #tpu.dot_dimension_numbers<[1], [0], [0], [1], [0, 0, 1, 1], [], []>} : vector<16x64xf32>, vector<64x64xf32>, vector<16x64xf32> -> vector<16x64xf32>
    %c0_13 = arith.constant 0 : index
    %c0_14 = arith.constant 0 : index
    %21 = vector.load %arg7[%c0_13, %c0_14] : memref<64x256xf32, #tpu.memory_space<vmem>>, vector<64x256xf32>
    %cst_15 = arith.constant dense<0.000000e+00> : vector<16x256xf32>
    %22 = tpu.matmul %20, %21, %cst_15 {dimension_numbers = #tpu.dot_dimension_numbers<[1], [0], [0], [1], [0, 0, 1, 1], [], []>} : vector<16x64xf32>, vector<64x256xf32>, vector<16x256xf32> -> vector<16x256xf32>
    %c0_16 = arith.constant 0 : index
    %c0_17 = arith.constant 0 : index
    %23 = vector.load %arg8[%c0_16, %c0_17] : memref<16x256xf32, #tpu.memory_space<vmem>>, vector<16x256xf32>
    %24 = arith.mulf %22, %23 : vector<16x256xf32>
    %c0_18 = arith.constant 0 : index
    %c0_19 = arith.constant 0 : index
    %25 = vector.load %arg9[%c0_18, %c0_19] : memref<2x16xf32, #tpu.memory_space<vmem>>, vector<2x16xf32>
    %cst_20 = arith.constant dense<0.000000e+00> : vector<2x256xf32>
    %26 = tpu.matmul %25, %24, %cst_20 {dimension_numbers = #tpu.dot_dimension_numbers<[1], [0], [0], [1], [0, 0, 1, 1], [], []>} : vector<2x16xf32>, vector<16x256xf32>, vector<2x256xf32> -> vector<2x256xf32>
    %c0_21 = arith.constant 0 : index
    %c0_22 = arith.constant 0 : index
    %c0_23 = arith.constant 0 : index
    %c0_24 = arith.constant 0 : index
    %27 = vector.load %arg15[%c0_21, %c0_22, %c0_23, %c0_24] : memref<1x2x2x256xf32, #tpu.memory_space<vmem>>, vector<1x1x2x256xf32>
    %28 = vector.shape_cast %27 : vector<1x1x2x256xf32> to vector<2x256xf32>
    %29 = vector.shape_cast %26 : vector<2x256xf32> to vector<1x1x2x256xf32>
    tpu.vector_store %arg15[%c0_21, %c0_22, %c0_23, %c0_24], %29 {strides = array<i32>} : memref<1x2x2x256xf32, #tpu.memory_space<vmem>>, vector<1x1x2x256xf32>,
    %c0_25 = arith.constant 0 : index
    %c0_26 = arith.constant 0 : index
    %c0_27 = arith.constant 0 : index
    %30 = vector.load %arg3[%c0_25, %c0_26, %c0_27] : memref<1x16x16xf32, #tpu.memory_space<vmem>>, vector<1x16x16xf32>
    %31 = vector.shape_cast %30 : vector<1x16x16xf32> to vector<16x16xf32>
    %cst_28 = arith.constant 2.500000e-01 : f32
    %32 = vector.broadcast %cst_28 : f32 to vector<16x16xf32>
    %33 = arith.mulf %31, %32 : vector<16x16xf32>
    %c0_29 = arith.constant 0 : index
    %c0_30 = arith.constant 0 : index
    %c0_31 = arith.constant 0 : index
    %34 = vector.load %arg4[%c0_29, %c0_30, %c0_31] : memref<1x16x16xf32, #tpu.memory_space<vmem>>, vector<1x16x16xf32>
    %35 = vector.shape_cast %34 : vector<1x16x16xf32> to vector<16x16xf32>
    %cst_32 = arith.constant dense<0.000000e+00> : vector<16x16xf32>
    %36 = tpu.matmul %33, %35, %cst_32 {dimension_numbers = #tpu.dot_dimension_numbers<[1], [1], [0], [0], [0, 0, 1, 0], [], []>} : vector<16x16xf32>, vector<16x16xf32>, vector<16x16xf32> -> vector<16x16xf32>
    %cst_33 = arith.constant dense<0xFF800000> : vector<16xf32>
    %37 = vector.multi_reduction <maximumf>, %36, %cst_33 [1] : vector<16x16xf32> to vector<16xf32>
    %38 = vector.shape_cast %37 : vector<16xf32> to vector<16x1xf32>
    %39 = vector.broadcast %38 : vector<16x1xf32> to vector<16x16xf32>
    %40 = arith.subf %36, %39 : vector<16x16xf32>
    %41 = math.exp %40 : vector<16x16xf32>
    %c0_34 = arith.constant 0 : index
    %c0_35 = arith.constant 0 : index
    %42 = vector.load %arg10[%c0_34, %c0_35] : memref<16x16xf32, #tpu.memory_space<vmem>>, vector<16x16xf32>
    %43 = arith.mulf %41, %42 : vector<16x16xf32>
    %cst_36 = arith.constant dense<0.000000e+00> : vector<16xf32>
    %44 = vector.multi_reduction <add>, %43, %cst_36 [1] : vector<16x16xf32> to vector<16xf32>
    %45 = vector.shape_cast %44 : vector<16xf32> to vector<16x1xf32>
    %46 = tpu.reciprocal %45 : vector<16x1xf32> -> vector<16x1xf32>
    %47 = vector.broadcast %46 : vector<16x1xf32> to vector<16x16xf32>
    %48 = arith.mulf %43, %47 : vector<16x16xf32>
    %c0_37 = arith.constant 0 : index
    %c0_38 = arith.constant 0 : index
    %49 = vector.load %arg11[%c0_37, %c0_38] : memref<4x16xf32, #tpu.memory_space<vmem>>, vector<4x16xf32>
    %cst_39 = arith.constant dense<0.000000e+00> : vector<4x16xf32>
    %50 = tpu.matmul %49, %48, %cst_39 {dimension_numbers = #tpu.dot_dimension_numbers<[1], [0], [0], [1], [0, 0, 1, 1], [], []>} : vector<4x16xf32>, vector<16x16xf32>, vector<4x16xf32> -> vector<4x16xf32>
    %c0_40 = arith.constant 0 : index
    %c0_41 = arith.constant 0 : index
    %51 = vector.load %arg12[%c0_40, %c0_41] : memref<16x256xf32, #tpu.memory_space<vmem>>, vector<16x256xf32>
    %cst_42 = arith.constant dense<0.000000e+00> : vector<4x256xf32>
    %52 = tpu.matmul %50, %51, %cst_42 {dimension_numbers = #tpu.dot_dimension_numbers<[1], [0], [0], [1], [0, 0, 1, 1], [], []>} : vector<4x16xf32>, vector<16x256xf32>, vector<4x256xf32> -> vector<4x256xf32>
    %c0_43 = arith.constant 0 : index
    %c0_44 = arith.constant 0 : index
    %53 = vector.load %arg13[%c0_43, %c0_44] : memref<4x256xf32, #tpu.memory_space<vmem>>, vector<4x256xf32>
    %54 = arith.mulf %52, %53 : vector<4x256xf32>
    %c0_45 = arith.constant 0 : index
    %c0_46 = arith.constant 0 : index
    %55 = vector.load %arg14[%c0_45, %c0_46] : memref<2x4xf32, #tpu.memory_space<vmem>>, vector<2x4xf32>
    %cst_47 = arith.constant dense<0.000000e+00> : vector<2x256xf32>
    %56 = tpu.matmul %55, %54, %cst_47 {dimension_numbers = #tpu.dot_dimension_numbers<[1], [0], [0], [1], [0, 0, 1, 1], [], []>} : vector<2x4xf32>, vector<4x256xf32>, vector<2x256xf32> -> vector<2x256xf32>
    %c0_48 = arith.constant 0 : index
    %c1 = arith.constant 1 : index
    %c0_49 = arith.constant 0 : index
    %c0_50 = arith.constant 0 : index
    %57 = vector.load %arg15[%c0_48, %c1, %c0_49, %c0_50] : memref<1x2x2x256xf32, #tpu.memory_space<vmem>>, vector<1x1x2x256xf32>
    %58 = vector.shape_cast %57 : vector<1x1x2x256xf32> to vector<2x256xf32>
    %59 = vector.shape_cast %56 : vector<2x256xf32> to vector<1x1x2x256xf32>
    tpu.vector_store %arg15[%c0_48, %c1, %c0_49, %c0_50], %59 {strides = array<i32>} : memref<1x2x2x256xf32, #tpu.memory_space<vmem>>, vector<1x1x2x256xf32>,
    return
  }
  func.func @transform_0(%arg0: i32) -> (i32, i32, i32) {
    %c0_i32 = arith.constant 0 : i32
    %c0_i32_0 = arith.constant 0 : i32
    %c0_i32_1 = arith.constant 0 : i32
    return %arg0, %c0_i32, %c0_i32_0 : i32, i32, i32
  }
  func.func @transform_1(%arg0: i32) -> (i32, i32, i32) {
    %c0_i32 = arith.constant 0 : i32
    %c0_i32_0 = arith.constant 0 : i32
    %c0_i32_1 = arith.constant 0 : i32
    return %arg0, %c0_i32, %c0_i32_0 : i32, i32, i32
  }
  func.func @transform_2(%arg0: i32) -> (i32, i32, i32) {
    %c0_i32 = arith.constant 0 : i32
    %c0_i32_0 = arith.constant 0 : i32
    %c0_i32_1 = arith.constant 0 : i32
    return %arg0, %c0_i32, %c0_i32_0 : i32, i32, i32
  }
  func.func @transform_3(%arg0: i32) -> (i32, i32, i32) {
    %c0_i32 = arith.constant 0 : i32
    %c0_i32_0 = arith.constant 0 : i32
    %c0_i32_1 = arith.constant 0 : i32
    return %arg0, %c0_i32, %c0_i32_0 : i32, i32, i32
  }
  func.func @transform_4(%arg0: i32) -> (i32, i32) {
    %c0_i32 = arith.constant 0 : i32
    %c0_i32_0 = arith.constant 0 : i32
    %c0_i32_1 = arith.constant 0 : i32
    return %c0_i32, %c0_i32_0 : i32, i32
  }
  func.func @transform_5(%arg0: i32) -> (i32, i32) {
    %c0_i32 = arith.constant 0 : i32
    %c0_i32_0 = arith.constant 0 : i32
    %c0_i32_1 = arith.constant 0 : i32
    return %c0_i32, %c0_i32_0 : i32, i32
  }
  func.func @transform_6(%arg0: i32) -> (i32, i32) {
    %c0_i32 = arith.constant 0 : i32
    %c0_i32_0 = arith.constant 0 : i32
    %c0_i32_1 = arith.constant 0 : i32
    return %c0_i32, %c0_i32_0 : i32, i32
  }
  func.func @transform_7(%arg0: i32) -> (i32, i32) {
    %c0_i32 = arith.constant 0 : i32
    %c0_i32_0 = arith.constant 0 : i32
    %c0_i32_1 = arith.constant 0 : i32
    return %c0_i32, %c0_i32_0 : i32, i32
  }
  func.func @transform_8(%arg0: i32) -> (i32, i32) {
    %c0_i32 = arith.constant 0 : i32
    %c0_i32_0 = arith.constant 0 : i32
    %c0_i32_1 = arith.constant 0 : i32
    return %c0_i32, %c0_i32_0 : i32, i32
  }
  func.func @transform_9(%arg0: i32) -> (i32, i32) {
    %c0_i32 = arith.constant 0 : i32
    %c0_i32_0 = arith.constant 0 : i32
    %c0_i32_1 = arith.constant 0 : i32
    return %c0_i32, %c0_i32_0 : i32, i32
  }
  func.func @transform_10(%arg0: i32) -> (i32, i32) {
    %c0_i32 = arith.constant 0 : i32
    %c0_i32_0 = arith.constant 0 : i32
    %c0_i32_1 = arith.constant 0 : i32
    return %c0_i32, %c0_i32_0 : i32, i32
  }
  func.func @transform_11(%arg0: i32) -> (i32, i32) {
    %c0_i32 = arith.constant 0 : i32
    %c0_i32_0 = arith.constant 0 : i32
    %c0_i32_1 = arith.constant 0 : i32
    return %c0_i32, %c0_i32_0 : i32, i32
  }
  func.func @transform_12(%arg0: i32) -> (i32, i32) {
    %c0_i32 = arith.constant 0 : i32
    %c0_i32_0 = arith.constant 0 : i32
    %c0_i32_1 = arith.constant 0 : i32
    return %c0_i32, %c0_i32_0 : i32, i32
  }
  func.func @transform_13(%arg0: i32) -> (i32, i32) {
    %c0_i32 = arith.constant 0 : i32
    %c0_i32_0 = arith.constant 0 : i32
    %c0_i32_1 = arith.constant 0 : i32
    return %c0_i32, %c0_i32_0 : i32, i32
  }
  func.func @transform_14(%arg0: i32) -> (i32, i32, i32, i32) {
    %c0_i32 = arith.constant 0 : i32
    %c0_i32_0 = arith.constant 0 : i32
    %c0_i32_1 = arith.constant 0 : i32
    %c0_i32_2 = arith.constant 0 : i32
    return %arg0, %c0_i32, %c0_i32_0, %c0_i32_1 : i32, i32, i32, i32
  }
}

</mosaic_0001>

<bundles_post_ra>
// kernel: tpu_custom_call.1
= control target key start
LH: loop header
LB: loop body
LE: loop exit
PB: predicated region body
PF: predicated region fallthrough
CT: control target
= control target key end

     0   :  { %s2731_s0 = inlined_call_operand.vmem [shape: f32[2,64,16], index: 0, kind: input, shape index: {}]   ;;  %s2732_s1 = inlined_call_operand.vmem [shape: f32[2,64,16], index: 1, kind: input, shape index: {}]   ;;  %s2733_s2 = inlined_call_operand.vmem [shape: f32[2,16,16], index: 2, kind: input, shape index: {}]   ;;  %s2734_s3 = inlined_call_operand.vmem [shape: f32[2,16,16], index: 3, kind: input, shape index: {}]   ;;  %s2735_s4 = inlined_call_operand.vmem [shape: f32[64,64], index: 4, kind: input, shape index: {}]   ;;  %s2736_s5 = inlined_call_operand.hbm [shape: f32[16,64], index: 5, kind: input, shape index: {}]   ;;  %s2737_s6 = inlined_call_operand.vmem [shape: f32[64,256], index: 6, kind: input, shape index: {}]   ;;  %s2738_s7 = inlined_call_operand.vmem [shape: f32[16,256], index: 7, kind: input, shape index: {}]   ;;  %s2739_s8 = inlined_call_operand.hbm [shape: f32[2,16], index: 8, kind: input, shape index: {}]   ;;  %s2740_s9 = inlined_call_operand.hbm [shape: f32[16,16], index: 9, kind: input, shape index: {}]   ;;  %s2741_s10 = inlined_call_operand.hbm [shape: f32[4,16], index: 10, kind: input, shape index: {}]   ;;  %s2742_s11 = inlined_call_operand.vmem [shape: f32[16,256], index: 11, kind: input, shape index: {}]   ;;  %s2743_s12 = inlined_call_operand.vmem [shape: f32[4,256], index: 12, kind: input, shape index: {}]   ;;  %s2744_s13 = inlined_call_operand.vmem [shape: f32[2,4], index: 13, kind: input, shape index: {}]   ;;  %s2745_s14 = inlined_call_operand.hbm [shape: f32[2,2,2,256], index: 14, kind: output, shape index: {}]  }
   0x1   :  { %2758 = sst [smem:[#allocation22_spill]] %s2736_s5 }
   0x2   :  { %2759 = sst [smem:[#allocation23_spill]] %s2739_s8 }
   0x3   :  { %2760 = sst [smem:[#allocation24_spill]] %s2745_s14 }
   0x4   :  { %19 = vsyncpa [#allocation3], 0 }
   0x5   :  { %20 = vsyncpa [#allocation6], 0 }
   0x6   :  { %21 = vsyncpa [#allocation9], 0 }
   0x7   :  { %22 = vsyncpa [#allocation4], 0 }
   0x8   :  { %24 = vsyncpa [#allocation4 + $0x1], 0  ;;  %s2301_s29 = smov 0   ;;  %s2303_s30 = smov 0  }
   0x9   :  { %s2305_s15 = smov 0   ;;  %s2307_s16 = smov 0  }
   0xa LB: > { %2761 = sst [smem:[#allocation15_spill]] %s2200_s29  ;;  %s2322_s17 = sadd.s32 4294967295, %s2212_s16   ;;  %s2212_s16 = sphi %s2307_s16, %s2791_s16   ;;  %s2208_s15 = sphi %s2305_s15, %s2796_s15   ;;  %s2204_s30 = sphi %s2303_s30, %s2795_s30   ;;  %s2200_s29 = sphi %s2301_s29, %s2794_s29  }
   0xb   : > { %2762 = sst [smem:[#allocation16_spill]] %s2208_s15  ;;  %s1667_s18 = sadd.s32 4294967294, %s2212_s16  }
   0xc   : > { %2763 = sst [smem:[#allocation17_spill]] %s2212_s16  ;;  %s2326_s19 = sadd.s32 1, %s2212_s16  }
   0xd   : > { %2764 = sst [smem:[#allocation18_spill]] %s2326_s19  ;;  %s351_s20 = sadd.s32 1, %s2208_s15 }
   0xe   : > { %s348_s21 = ssub.s32 %s2212_s16, %s2326_s19  ;;  %p361_p0 = scmp.ne.s32.totalorder %s2208_s15, %s2204_s30 }
   0xf   : > { %p349_p1 = scmp.eq.s32.totalorder %s348_s21, 0  ;;  %p362_p2 = scmp.eq.s32.totalorder %s2322_s17, 1 }
  0x10   : > { %p367_p3 = scmp.ne.s32.totalorder %s2204_s30, %s2200_s29  ;;  %p368_p4 = scmp.eq.s32.totalorder %s1667_s18, 1 }
  0x11   : > { %s2337_s22 = scalar_select %p349_p1, %s2208_s15, %s351_s20  }
  0x12   : > { %p2339_p5 = por %p362_p2, %p361_p0  ;;  %p2343_p6 = por %p368_p4, %p367_p3 }
  0x13   : > { %2765 = sst [smem:[#allocation19_spill]] %s2337_s22  ;;  %p1668_p7 = scmp.ge.s32.totalorder %s2212_s16, 1 }
  0x14   : > { %s2766_s23 = scalar_select %p2339_p5, 1, 0 }
  0x15   : > { %s2768_s24 = scalar_select %p2343_p6, 1, 0 }
  0x16   : > { %2767 = sst [smem:[#allocation20_spill]] %s2766_s23  ;;  %p375_p8 = scmp.lt.s32.totalorder %s2212_s16, 3 }
  0x17   : > { %2769 = sst [smem:[#allocation21_spill]] %s2768_s24  ;;  %p2752_p9 = scmp.eq.s32.totalorder %s2322_s17, 0 }
  0x18   : > { %p2350_p10 = pnand %p1668_p7, %p375_p8  ;;  %s2214_s26 = smov [#allocation5]  }
  0x19   : > { %s410_s27 = sshll.u32 %s2214_s26, 4  ;;  %s2215_s28 = smov [#allocation2]   ;;  %s411_s27 = int_to_ptr.vmem [resolvable:$true] %s410_s27 }
  0x1a   : > { %s2770_s25 = scalar_select %p2350_p10, 1, 0 }
  0x1b   : > { %p1916_p11 = pneg %p2350_p10  ;;  %s390_s18 = sshll.u32 %s2215_s28, 4  ;;  %s2362_s18 = int_to_ptr.vmem [resolvable:$true] %s390_s18 }
  0x1c   : > { %s2216_s21 = smov [#allocation7]   ;;  %s2772_s8 = sld [smem:[#allocation23_spill]] }
  0x1d   : > { %p2358_p12 = pnand %p2752_p9, %p1916_p11  ;;  %s2364_s22 = sshll.u32 %s2216_s21, 4  ;;  %s421_s22 = int_to_ptr.vmem [resolvable:$true] %s2364_s22 }
  0x1f   : > { %p2374_p0 = pneg %p2358_p12 }
  0x22   : > { %s2026_s26 = scalar_lea.hbm %s2772_s8, 32 }
  0x23   : > { %p2027_p13 = scmp.ne.s32.totalorder %s2772_s8, %s2026_s26  ;;  %p2033_p3 = scmp.lt.u32.totalorder %s2026_s26, %s2772_s8 }
  0x25   : > { %p2029_p1 = pnand %p2374_p0, %p2027_p13 }
  0x27   : > { %p2030_p2 = pneg %p2029_p1 }
  0x29   : > { %p2035_p4 = pnand %p2033_p3, %p2030_p2 }
  0x2b   : > { %2038 = shalt.err (!%p2035_p4)
}
  0x2c   : > { %s2039_s15 = scalar_lea.vmem %s411_s27, 32  ;;  %p2047_p9 = scmp.lt.s32.totalorder %s411_s27, %s411_s27 }
  0x2d   : > { %p2040_p7 = scmp.ne.s32.totalorder %s411_s27, %s2039_s15  ;;  %p2048_p6 = scmp.lt.s32.totalorder %s2039_s15, %s2039_s15 }
  0x2f   : > { %p2042_p8 = pnand %p2040_p7, %p2374_p0  ;;  %p2049_p5 = por %p2048_p6, %p2047_p9 }
  0x31   : > { %p2043_p11 = pneg %p2042_p8 }
  0x33   : > { %p2050_p10 = pnand %p2049_p5, %p2043_p11 }
  0x35   : > { %2053 = shalt.err (!%p2050_p10)
}
  0x36   : > { %1922 = dma.hbm_to_vmem [thread:$0]  (!%p2358_p12), %s2772_s8, 32, %s411_s27, [#allocation6]  }
  0x37   : > { %s2774_s5 = sld [smem:[#allocation22_spill]] }
  0x3d   : > { %s2054_s26 = scalar_lea.hbm %s2774_s5, 256 }
  0x3e   : > { %p2055_p13 = scmp.ne.s32.totalorder %s2774_s5, %s2054_s26  ;;  %p2061_p5 = scmp.lt.u32.totalorder %s2054_s26, %s2774_s5 }
  0x40   : > { %p2057_p1 = pnand %p2055_p13, %p2374_p0 }
  0x42   : > { %p2058_p6 = pneg %p2057_p1 }
  0x44   : > { %p2063_p9 = pnand %p2061_p5, %p2058_p6 }
  0x46   : > { %2066 = shalt.err (!%p2063_p9)
}
  0x47   : > { %s2067_s27 = scalar_lea.vmem %s2362_s18, 256  ;;  %p2075_p4 = scmp.lt.s32.totalorder %s2362_s18, %s2362_s18 }
  0x48   : > { %p2068_p10 = scmp.ne.s32.totalorder %s2362_s18, %s2067_s27  ;;  %p2076_p7 = scmp.lt.s32.totalorder %s2067_s27, %s2067_s27 }
  0x4a   : > { %p2070_p2 = pnand %p2068_p10, %p2374_p0  ;;  %p2077_p8 = por %p2076_p7, %p2075_p4 }
  0x4c   : > { %p2071_p3 = pneg %p2070_p2 }
  0x4e   : > { %p2078_p11 = pnand %p2077_p8, %p2071_p3 }
  0x50   : > { %2081 = shalt.err (!%p2078_p11)
}
  0x51   : > { %s2217_s14 = smov 128   ;;  %s2218_s23 = smov 8  }
  0x52   : > { %1919 = dma.hbm_to_vmem [thread:$0]  (!%p2358_p12), %s2774_s5, 256, %s2362_s18, [#allocation3], %s2217_s14, %s2217_s14, %s2218_s23  }
  0x53   : > { %s2082_s26 = scalar_lea.hbm %s2740_s9, 256 }
  0x54   : > { %p2083_p13 = scmp.ne.s32.totalorder %s2740_s9, %s2082_s26  ;;  %p2089_p5 = scmp.lt.u32.totalorder %s2082_s26, %s2740_s9 }
  0x56   : > { %p2085_p1 = pnand %p2083_p13, %p2374_p0 }
  0x58   : > { %p2086_p6 = pneg %p2085_p1 }
  0x5a   : > { %p2091_p9 = pnand %p2089_p5, %p2086_p6 }
  0x5c   : > { %2094 = shalt.err (!%p2091_p9)
}
  0x5d   : > { %s2095_s29 = scalar_lea.vmem %s421_s22, 256  ;;  %p2103_p4 = scmp.lt.s32.totalorder %s421_s22, %s421_s22 }
  0x5e   : > { %p2096_p10 = scmp.ne.s32.totalorder %s421_s22, %s2095_s29  ;;  %p2104_p7 = scmp.lt.s32.totalorder %s2095_s29, %s2095_s29 }
  0x60   : > { %p2098_p2 = pnand %p2096_p10, %p2374_p0  ;;  %p2105_p8 = por %p2104_p7, %p2103_p4 }
  0x62   : > { %p2099_p3 = pneg %p2098_p2 }
  0x64   : > { %p2106_p11 = pnand %p2105_p8, %p2099_p3 }
  0x66   : > { %2109 = shalt.err (!%p2106_p11)
}
  0x67   : > { %1925 = dma.hbm_to_vmem [thread:$0]  (!%p2358_p12), %s2740_s9, 256, %s421_s22, [#allocation6], %s2217_s14, %s2217_s14, %s2218_s23  }
  0x68   : > { %s2219_s8 = smov [#allocation8]   ;;  %s2110_s21 = scalar_lea.hbm %s2741_s10, 64 }
  0x69   : > { %s434_s16 = sshll.u32 %s2219_s8, 4  ;;  %p2111_p13 = scmp.ne.s32.totalorder %s2741_s10, %s2110_s21  ;;  %s435_s16 = int_to_ptr.vmem [resolvable:$true] %s434_s16 }
  0x6a   : > { %p2117_p5 = scmp.lt.u32.totalorder %s2110_s21, %s2741_s10 }
  0x6b   : > { %p2113_p1 = pnand %p2111_p13, %p2374_p0 }
  0x6d   : > { %p2114_p6 = pneg %p2113_p1 }
  0x6f   : > { %p2119_p9 = pnand %p2117_p5, %p2114_p6 }
  0x71   : > { %2122 = shalt.err (!%p2119_p9)
}
  0x72   : > { %s2123_s22 = scalar_lea.vmem %s435_s16, 64  ;;  %p2131_p4 = scmp.lt.s32.totalorder %s435_s16, %s435_s16 }
  0x73   : > { %p2124_p10 = scmp.ne.s32.totalorder %s435_s16, %s2123_s22  ;;  %p2132_p7 = scmp.lt.s32.totalorder %s2123_s22, %s2123_s22 }
  0x75   : > { %p2126_p2 = pnand %p2124_p10, %p2374_p0  ;;  %p2133_p8 = por %p2132_p7, %p2131_p4 }
  0x77   : > { %p2127_p3 = pneg %p2126_p2 }
  0x79   : > { %p2134_p11 = pnand %p2133_p8, %p2127_p3 }
  0x7b   : > { %2137 = shalt.err (!%p2134_p11)
}
  0x7c   : > { %1928 = dma.hbm_to_vmem [thread:$0]  (!%p2358_p12), %s2741_s10, 64, %s435_s16, [#allocation9]  }
  0x7d   : > { %p2775_p13 = scmp.ne.s32.totalorder %s2770_s25, 0 }
  0x7e   : > { %p2776_p1 = scmp.eq.s32.totalorder (!%p2775_p13), %s2322_s17, 0 }
  0x7f   : > { %488 = sbr.rel (%p2775_p13) target bundleno = 1835 (0x72b), region = 76 }
  0x86   : > { %2183 = dma.done.wait (%p2776_p1), [#allocation3], 256   ;;  %p2777_p0 = pmov %p2776_p1 }
  0x88   : > { %2185 = vsyncadd (%p2777_p0), [#allocation3], 4294967040  ;;  %p2778_p6 = pmov %p2777_p0 }
  0x89   : > { %p2779_p5 = pmov %p2777_p0 }
  0x8a   : > { %2187 = dma.done.wait (%p2778_p6), [#allocation6], 288  }
  0x8b   : > { %2189 = vsyncadd (%p2779_p5), [#allocation6], 4294967008  ;;  %p2780_p9 = pmov %p2777_p0 }
  0x8c   : > { %p2781_p12 = pmov %p2777_p0 }
  0x8d   : > { %2191 = dma.done.wait (%p2780_p9), [#allocation9], 64  }
  0x8e   : > { %2193 = vsyncadd (%p2781_p12), [#allocation9], 4294967232  ;;  %p561_p10 = scmp.lt.s32.totalorder %s2322_s17, 1  ;;  %vm605_vm0 = vcmask 130048   ;;  %vm759_vm2 = vcmask 523264   ;;  %vm2222_vm3 = vmmov 0  }
  0x8f   : > { %vm2474_vm1 = vmpackc.low %vm605_vm0, %vm605_vm0  ;;  %vm1423_vm4 = vcmask 1043456   ;;  %vm1419_vm5 = vcmask 31744   ;;  %s1730_s28 = sshll.u32 %s2322_s17, 7  ;;  %s2785_s8 = sld [smem:[#allocation24_spill]] }
  0x90   : > { %s2466_s5 = scalar_select %p561_p10, %s2322_s17, 1 }
  0x91   : > { %s2223_s17 = smov [#allocation10]  }
  0x92   : > { %s1725_s25 = sshll.u32 %s2466_s5, 6  ;;  %s1727_s24 = sshll.u32 %s2466_s5, 4 }
  0x93   : > { %s570_s18 = scalar_lea.vmem %s2732_s1, %s1725_s25  ;;  %s2481_s16 = scalar_lea.vmem %s2731_s0, %s1725_s25 }
  0x94   : > { %v597_v1 = vld [vmem:[%s570_s18] sm:$0xff]  ;;  %v598_v2 = vld [vmem:[%s570_s18 + $0x8] sm:$0xff]  ;;  %v599_v3 = vld [vmem:[%s570_s18 + $0x10] sm:$0xff]  ;;  %s580_s15 = scalar_lea.vmem %s2734_s3, %s1727_s24  ;;  %s575_s22 = scalar_lea.vmem %s2733_s2, %s1727_s24 }
  0x95   : > { %v1825_v4 = vpack.c.bf16 %v598_v2, %v597_v1  ;;  %v600_v5 = vld [vmem:[%s570_s18 + $0x18] sm:$0xff]  ;;  %v581_v7 = vld [vmem:[%s2481_s16] sm:$0xff]  ;;  %v602_v10 = vld [vmem:[%s570_s18 + $0x28] sm:$0xff]  ;;  %s2784_s25 = sld [smem:[#allocation20_spill]]  ;;  %s2142_s21 = sshll.u32 %s2223_s17, 4  ;;  %s2143_s21 = int_to_ptr.vmem [resolvable:$false] %s2142_s21 }
  0x96   : > { %v1831_v6 = vpack.c.bf16 %v600_v5, %v599_v3  ;;  %v589_v8 = vmul.f32 0.25, %v581_v7  ;;  %v601_v9 = vld [vmem:[%s570_s18 + $0x20] sm:$0xff]  ;;  %v603_v12 = vld [vmem:[%s570_s18 + $0x30] sm:$0xff]  ;;  %v604_v13 = vld [vmem:[%s570_s18 + $0x38] sm:$0xff] }
  0x97   : > { %1827 = vmatprep.subr.msk.bf16.mxu0 %vm2474_vm1, %v1825_v4  ;;  %v1837_v11 = vpack.c.bf16 %v602_v10, %v601_v9  ;;  %v1843_v14 = vpack.c.bf16 %v604_v13, %v603_v12  ;;  %v1145_v15 = vld [vmem:[%s580_s15] sm:$0xff]  ;;  %v1146_v16 = vld [vmem:[%s580_s15 + $0x8] sm:$0xff]  ;;  %v583_v19 = vld [vmem:[%s2481_s16 + $0x10] sm:$0xff]  ;;  %s558_s15 = sand.u32 1, %s2204_s30  }
  0x98   : > { %1830 = vmatpush3.bf16.xpose.msk.msra.mxu0 %vm2474_vm1, %v1825_v4  ;;  %1780 = vmatprep.mubr.msk.f32.mxu0 %vm605_vm0, %v589_v8  ;;  %v1885_v17 = vpack.c.bf16 %v1146_v16, %v1145_v15  ;;  %v582_v18 = vld [vmem:[%s2481_s16 + $0x8] sm:$0xff]  ;;  %v591_v21 = vmul.f32 0.25, %v583_v19  ;;  %v584_v22 = vld [vmem:[%s2481_s16 + $0x18] sm:$0xff]  ;;  %v585_v23 = vld [vmem:[%s2481_s16 + $0x20] sm:$0xff]  ;;  %s1679_s27 = sshll.u32 %s558_s15, 3  ;;  %s2690_s24 = scalar_lea.sflag [#allocation4], %s558_s15 }
  0x99   : > { %1833 = vmatprep.subr.msk.bf16.mxu0 %vm2474_vm1, %v1831_v6  ;;  %v590_v20 = vmul.f32 0.25, %v582_v18  ;;  %v592_v24 = vmul.f32 0.25, %v584_v22  ;;  %v593_v25 = vmul.f32 0.25, %v585_v23  ;;  %v586_v26 = vld [vmem:[%s2481_s16 + $0x28] sm:$0xff]  ;;  %v587_v27 = vld [vmem:[%s2481_s16 + $0x30] sm:$0xff]  ;;  %v588_v30 = vld [vmem:[%s2481_s16 + $0x38] sm:$0xff]  ;;  %s2686_s16 = scalar_lea.hbm %s2785_s8, %s1730_s28 }
  0x9a   : > { %v594_v28 = vmul.f32 0.25, %v586_v26  ;;  %v595_v29 = vmul.f32 0.25, %v587_v27  ;;  %v1141_v31 = vld [vmem:[%s575_s22] sm:$0xff]  ;;  %v596_v32 = vmul.f32 0.25, %v588_v30  ;;  %v1142_v33 = vld [vmem:[%s575_s22 + $0x8] sm:$0xff]  ;;  %v810_v23 = vld [vmem:[%s2735_s4 + $0x10] sm:$0xff] }
  0x9b   : > { %v1143_v34 = vmul.f32 0.25, %v1141_v31  ;;  %v1144_v35 = vmul.f32 0.25, %v1142_v33  ;;  %v808_v9 = vld [vmem:[%s2735_s4] sm:$0xff]  ;;  %v809_v16 = vld [vmem:[%s2735_s4 + $0x8] sm:$0xff]  ;;  %s560_s29 = scalar_lea.vmem [#allocation10], %s1679_s27  ;;  %p2786_p3 = scmp.ne.s32.totalorder %s2784_s25, 0 }
  0x9c   : > { %v812_v27 = vld [vmem:[%s2735_s4 + $0x20] sm:$0xff]  ;;  %v813_v30 = vld [vmem:[%s2735_s4 + $0x28] sm:$0xff]  ;;  %s1528_s20 = sshll.u32 %s560_s29, 4  ;;  %s2144_s27 = scalar_lea.vmem %s2143_s21, 256  ;;  %s2681_s20 = int_to_ptr.vmem [resolvable:$true] %s1528_s20 }
  0x9d   : > { %s2138_s26 = scalar_lea.vmem %s2681_s20, 128  ;;  %p2145_p8 = scmp.lt.s32.totalorder %s2681_s20, %s2143_s21 }
  0x9e   : > { %p2139_p2 = scmp.ne.s32.totalorder %s2681_s20, %s2138_s26  ;;  %p2146_p11 = scmp.lt.s32.totalorder %s2144_s27, %s2138_s26 }
  0xa0   : > { %1836 = vmatpush3.bf16.xpose.msk.msra.mxu0 %vm2474_vm1, %v1831_v6  ;;  %p2140_p4 = pnand %p2139_p2, %p2786_p3  ;;  %p2147_p13 = por %p2146_p11, %p2145_p8 }
  0xa1   : > { %1839 = vmatprep.subr.msk.bf16.mxu0 %vm2474_vm1, %v1837_v11 }
  0xa2   : > { %p2141_p7 = pneg %p2140_p4 }
  0xa4   : > { %p2148_p1 = pnand %p2147_p13, %p2141_p7 }
  0xa8   : > { %1842 = vmatpush3.bf16.xpose.msk.msra.mxu0 %vm2474_vm1, %v1837_v11 }
  0xa9   : > { %1845 = vmatprep.subr.msk.bf16.mxu0 %vm2474_vm1, %v1843_v14 }
  0xb0   : > { %1848 = vmatpush3.bf16.xpose.msk.msra.mxu0 %vm2474_vm1, %v1843_v14 }
  0xb1   : > { %1887 = vmatprep.subr.msk.bf16.mxu0 %vm2474_vm1, %v1885_v17 }
  0xb7   : > { %1781 = vmatmul.mubr.msk.f32.vlgmr.msra.gmra.mrb[0].mxu0 %vm605_vm0, %v590_v20 }
  0xb8   : > { %1783 = vmatprep.mubr.msk.f32.mxu0 %vm605_vm0, %v591_v21  ;;  %1890 = vmatpush3.bf16.xpose.msk.msra.mxu0 %vm2474_vm1, %v1885_v17  ;;  %v811_v21 = vld [vmem:[%s2735_s4 + $0x18] sm:$0xff] }
  0xbb   : > { %1784 = vmatmul.mubr.msk.f32.gmra.mrb[2].mxu0 %vm605_vm0, %v592_v24 }
  0xbc   : > { %1786 = vmatprep.mubr.msk.f32.mxu0 %vm605_vm0, %v593_v25 }
  0xbf   : > { %1787 = vmatmul.mubr.msk.f32.gmra.mrb[4].mxu0 %vm605_vm0, %v594_v28 }
  0xc0   : > { %1789 = vmatprep.mubr.msk.f32.mxu0 %vm605_vm0, %v595_v29 }
  0xc3   : > { %1790 = vmatmul.mubr.msk.f32.gmra.mrb[6].mxu0 %vm605_vm0, %v596_v32 }
  0xc4   : > { %1815 = vmatprep.mubr.msk.f32.mxu0 %vm605_vm0, %v1143_v34 }
  0xc7   : > { %1816 = vmatmul.mubr.msk.f32.vlgmr.msra.gmra.mrb[8].mxu0 %vm605_vm0, %v1144_v35  ;;  %v814_v35 = vld [vmem:[%s2735_s4 + $0x30] sm:$0xff] }
 0x18a   : > { %v1782_v36 = vpop.f32.mrb[0].mxu0 }
 0x18b   : > { %v720_v37 = vpop.f32.mrb[1].mxu0  ;;  %v763_v42 = vsel %vm759_vm2, %v1782_v36, -inf }
 0x18c   : > { %v760_v38 = vsel %vm759_vm2, %v720_v37, -inf }
 0x18d   : > { %761 = vmax.xlane.f32.xlu0 %v760_v38  ;;  %v815_v38 = vld [vmem:[%s2735_s4 + $0x38] sm:$0xff] }
 0x18e   : > { %v1785_v39 = vpop.f32.mrb[2].mxu0 }
 0x18f   : > { %v730_v40 = vpop.f32.mrb[3].mxu0  ;;  %v769_v41 = vsel %vm759_vm2, %v1785_v39, -inf }
 0x190   : > { %770 = vmax.xlane.f32.xlu1 %v769_v41  ;;  %v766_v45 = vsel %vm759_vm2, %v730_v40, -inf }
 0x191   : > { %764 = vmax.xlane.f32.xlu0 %v763_v42 }
 0x192   : > { %v1788_v43 = vpop.f32.mrb[4].mxu0 }
 0x193   : > { %v740_v44 = vpop.f32.mrb[5].mxu0  ;;  %v775_v47 = vsel %vm759_vm2, %v1788_v43, -inf }
 0x194   : > { %767 = vmax.xlane.f32.xlu1 %v766_v45  ;;  %v772_v46 = vsel %vm759_vm2, %v740_v44, -inf }
 0x195   : > { %773 = vmax.xlane.f32.xlu0 %v772_v46 }
 0x196   : > { %v1791_v48 = vpop.f32.mrb[6].mxu0 }
 0x197   : > { %v750_v49 = vpop.f32.mrb[7].mxu0  ;;  %v781_v51 = vsel %vm759_vm2, %v1791_v48, -inf }
 0x198   : > { %776 = vmax.xlane.f32.xlu1 %v775_v47  ;;  %v778_v50 = vsel %vm759_vm2, %v750_v49, -inf }
 0x199   : > { %779 = vmax.xlane.f32.xlu0 %v778_v50 }
 0x19a   : > { %v2536_v52 = vpop.f32.mrb[8].mxu0 }
 0x19b   : > { %v2538_v53 = vpop.f32.mrb[9].mxu0  ;;  %v1237_v47 = vsel %vm605_vm0, %v2536_v52, -inf }
 0x19c   : > { %782 = vmax.xlane.f32.xlu1 %v781_v51  ;;  %v1234_v46 = vsel %vm605_vm0, %v2538_v53, -inf }
 0x21a   : > { %v762_v54 = vpop.xlane.xlu0 %761 }
 0x21b   : > { %v784_v55 = vsub.f32 %v720_v37, %v762_v54 }
 0x21d   : > { %v792_v56 = vmul.f32 1.442695, %v784_v55  ;;  %v771_v57 = vpop.xlane.xlu1 %770 }
 0x21e   : > { %v787_v58 = vsub.f32 %v1785_v39, %v771_v57  ;;  %v765_v59 = vpop.xlane.xlu0 %764 }
 0x21f   : > { %1986 = vpow2.f32 %v792_v56  ;;  %v785_v60 = vsub.f32 %v1782_v36, %v765_v59 }
 0x220   : > { %v798_v61 = vmul.f32 1.442695, %v787_v58 }
 0x221   : > { %v794_v62 = vmul.f32 1.442695, %v785_v60  ;;  %v768_v63 = vpop.xlane.xlu1 %767 }
 0x222   : > { %1988 = vpow2.f32 %v798_v61  ;;  %v786_v0 = vsub.f32 %v730_v40, %v768_v63  ;;  %v774_v1 = vpop.xlane.xlu0 %773 }
 0x223   : > { %1990 = vpow2.f32 %v794_v62  ;;  %v788_v2 = vsub.f32 %v740_v44, %v774_v1 }
 0x224   : > { %v796_v3 = vmul.f32 1.442695, %v786_v0 }
 0x225   : > { %v800_v4 = vmul.f32 1.442695, %v788_v2  ;;  %v777_v5 = vpop.xlane.xlu1 %776 }
 0x226   : > { %1992 = vpow2.f32 %v796_v3  ;;  %v789_v6 = vsub.f32 %v1788_v43, %v777_v5  ;;  %v780_v7 = vpop.xlane.xlu0 %779 }
 0x227   : > { %1994 = vpow2.f32 %v800_v4  ;;  %v790_v8 = vsub.f32 %v750_v49, %v780_v7 }
 0x228   : > { %v802_v10 = vmul.f32 1.442695, %v789_v6 }
 0x229   : > { %v1987_v11 = vpop.eup %1986  ;;  %v804_v12 = vmul.f32 1.442695, %v790_v8  ;;  %v783_v13 = vpop.xlane.xlu1 %782 }
 0x22a   : > { %1996 = vpow2.f32 %v802_v10  ;;  %v791_v14 = vsub.f32 %v1791_v48, %v783_v13  ;;  %v2543_v15 = vmul.f32 %v1987_v11, %v808_v9  ;;  %v864_v48 = vld [vmem:[#allocation2] sm:$0xff] }
 0x22b   : > { %1998 = vpow2.f32 %v804_v12  ;;  %1808 = vmatprep.mubr.msk.f32.mxu1 %vm759_vm2, %v864_v48 }
 0x22c   : > { %v1989_v17 = vpop.eup %1988  ;;  %v806_v18 = vmul.f32 1.442695, %v791_v14  ;;  %v824_v19 = vsel %vm759_vm2, %v2543_v15, 0.0 }
 0x22d   : > { %v1991_v20 = vpop.eup %1990  ;;  %825 = vadd.xlane.f32.xlu0 %v824_v19  ;;  %v819_v26 = vmul.f32 %v1989_v17, %v811_v21  ;;  %v1246_v19 = vld [vmem:[#allocation7] sm:$0xff]  ;;  %v1247_v21 = vld [vmem:[#allocation7 + $0x8] sm:$0xff] }
 0x22e   : > { %2000 = vpow2.f32 %v806_v18  ;;  %v817_v22 = vmul.f32 %v1991_v20, %v809_v16  ;;  %v865_v20 = vld [vmem:[#allocation2 + $0x8] sm:$0xff] }
 0x22f   : > { %v833_v34 = vsel %vm759_vm2, %v819_v26, 0.0 }
 0x230   : > { %v1993_v24 = vpop.eup %1992  ;;  %v827_v25 = vsel %vm759_vm2, %v817_v22, 0.0 }
 0x231   : > { %v1995_v28 = vpop.eup %1994  ;;  %828 = vadd.xlane.f32.xlu1 %v827_v25  ;;  %v818_v29 = vmul.f32 %v1993_v24, %v810_v23 }
 0x232   : > { %v820_v32 = vmul.f32 %v1995_v28, %v812_v27  ;;  %v948_v28 = vld [vmem:[%s2737_s6 + $0x8] sm:$0xff] }
 0x233   : > { %v830_v31 = vsel %vm759_vm2, %v818_v29, 0.0 }
 0x234   : > { %v1997_v33 = vpop.eup %1996  ;;  %831 = vadd.xlane.f32.xlu0 %v830_v31  ;;  %v836_v39 = vsel %vm759_vm2, %v820_v32, 0.0 }
 0x235   : > { %v1999_v36 = vpop.eup %1998  ;;  %834 = vadd.xlane.f32.xlu1 %v833_v34  ;;  %v821_v37 = vmul.f32 %v1997_v33, %v813_v30  ;;  %v947_v30 = vld [vmem:[%s2737_s6] sm:$0xff]  ;;  %v952_v33 = vld [vmem:[%s2737_s6 + $0x28] sm:$0xff]  ;;  %v954_v34 = vld [vmem:[%s2737_s6 + $0x38] sm:$0xff] }
 0x236   : > { %v822_v41 = vmul.f32 %v1999_v36, %v814_v35  ;;  %v1869_v36 = vpack.c.bf16 %v954_v34, %v952_v33 }
 0x237   : > { %v839_v40 = vsel %vm759_vm2, %v821_v37, 0.0 }
 0x238   : > { %v2001_v42 = vpop.eup %2000  ;;  %837 = vadd.xlane.f32.xlu0 %v836_v39  ;;  %v842_v44 = vsel %vm759_vm2, %v822_v41, 0.0  ;;  %v956_v39 = vld [vmem:[%s2737_s6 + $0x48] sm:$0xff] }
 0x239   : > { %840 = vadd.xlane.f32.xlu1 %v839_v40  ;;  %v823_v43 = vmul.f32 %v2001_v42, %v815_v38  ;;  %v953_v38 = vld [vmem:[%s2737_s6 + $0x30] sm:$0xff]  ;;  %v958_v40 = vld [vmem:[%s2737_s6 + $0x58] sm:$0xff] }
 0x23a   : > { %v1873_v42 = vpack.c.bf16 %v958_v40, %v956_v39 }
 0x23b   : > { %v845_v45 = vsel %vm759_vm2, %v823_v43, 0.0 }
 0x23c   : > { %843 = vadd.xlane.f32.xlu0 %v842_v44  ;;  %v957_v44 = vld [vmem:[%s2737_s6 + $0x50] sm:$0xff] }
 0x23d   : > { %846 = vadd.xlane.f32.xlu1 %v845_v45  ;;  %v960_v45 = vld [vmem:[%s2737_s6 + $0x68] sm:$0xff] }
 0x240   : > { %1235 = vmax.xlane.f32.xlu0 %v1234_v46  ;;  %v962_v46 = vld [vmem:[%s2737_s6 + $0x78] sm:$0xff] }
 0x241   : > { %1238 = vmax.xlane.f32.xlu1 %v1237_v47  ;;  %v1877_v48 = vpack.c.bf16 %v962_v46, %v960_v45 }
 0x2ba   : > { %v826_v49 = vpop.xlane.xlu0 %825 }
 0x2bb   : > { %2002 = vrcp.f32 %v826_v49  ;;  %v959_v49 = vld [vmem:[%s2737_s6 + $0x60] sm:$0xff] }
 0x2be   : > { %v829_v50 = vpop.xlane.xlu1 %828 }
 0x2bf   : > { %2004 = vrcp.f32 %v829_v50  ;;  %v961_v50 = vld [vmem:[%s2737_s6 + $0x70] sm:$0xff] }
 0x2c1   : > { %v832_v51 = vpop.xlane.xlu0 %831 }
 0x2c2   : > { %2006 = vrcp.f32 %v832_v51  ;;  %v835_v54 = vpop.xlane.xlu1 %834  ;;  %v1879_v51 = vpack.c.bf16 %v961_v50, %v959_v49 }
 0x2c3   : > { %2008 = vrcp.f32 %v835_v54  ;;  %v2220_v54 = vmov 0.0  }
 0x2c4   : > { %1494 = vmatprep.mubr.f32.mxu0 %v2220_v54 }
 0x2c5   : > { %v838_v55 = vpop.xlane.xlu0 %837  ;;  %v2003_v57 = vpop.eup %2002 }
 0x2c6   : > { %2010 = vrcp.f32 %v838_v55  ;;  %v841_v56 = vpop.xlane.xlu1 %840  ;;  %v856_v61 = vmul.f32 %v2003_v57, %v2543_v15 }
 0x2c7   : > { %2012 = vrcp.f32 %v841_v56 }
 0x2c9   : > { %v2005_v58 = vpop.eup %2004  ;;  %v844_v59 = vpop.xlane.xlu0 %843 }
 0x2ca   : > { %2014 = vrcp.f32 %v844_v59  ;;  %v847_v60 = vpop.xlane.xlu1 %846  ;;  %v857_v62 = vmul.f32 %v2005_v58, %v817_v22 }
 0x2cb   : > { %2016 = vrcp.f32 %v847_v60 }
 0x2cc   : > { %v2007_v63 = vpop.eup %2006  ;;  %v1849_v0 = vpack.c.bf16 %v857_v62, %v856_v61  ;;  %v1046_v61 = vld [vmem:[%s2738_s7] sm:$0xff]  ;;  %v1048_v62 = vld [vmem:[%s2738_s7 + $0x10] sm:$0xff] }
 0x2cd   : > { %v2009_v1 = vpop.eup %2008  ;;  %v1236_v2 = vpop.xlane.xlu0 %1235  ;;  %v858_v3 = vmul.f32 %v2007_v63, %v818_v29  ;;  %v950_v29 = vld [vmem:[%s2737_s6 + $0x18] sm:$0xff]  ;;  %v1047_v63 = vld [vmem:[%s2738_s7 + $0x8] sm:$0xff] }
 0x2ce   : > { %v1240_v4 = vsub.f32 %v2538_v53, %v1236_v2  ;;  %v1239_v5 = vpop.xlane.xlu1 %1238  ;;  %1850 = vmatprep.subr.bf16.mxu1 %v1849_v0  ;;  %v859_v6 = vmul.f32 %v2009_v1, %v819_v26  ;;  %v1865_v31 = vpack.c.bf16 %v950_v29, %v948_v28 }
 0x2cf   : > { %v1241_v7 = vsub.f32 %v2536_v52, %v1239_v5  ;;  %1852 = vmatpush3.bf16.msra.mxu1 %v1849_v0  ;;  %v1049_v0 = vld [vmem:[%s2738_s7 + $0x18] sm:$0xff] }
 0x2d0   : > { %v2011_v8 = vpop.eup %2010  ;;  %v1242_v9 = vmul.f32 1.442695, %v1240_v4  ;;  %v1853_v10 = vpack.c.bf16 %v859_v6, %v858_v3 }
 0x2d1   : > { %v2013_v11 = vpop.eup %2012  ;;  %v1244_v12 = vmul.f32 1.442695, %v1241_v7  ;;  %v860_v13 = vmul.f32 %v2011_v8, %v820_v32  ;;  %v949_v32 = vld [vmem:[%s2737_s6 + $0x10] sm:$0xff] }
 0x2d2   : > { %2018 = vpow2.f32 %v1242_v9  ;;  %1854 = vmatprep.subr.bf16.mxu1 %v1853_v10  ;;  %v861_v14 = vmul.f32 %v2013_v11, %v821_v37  ;;  %v1867_v35 = vpack.c.bf16 %v949_v32, %v947_v30  ;;  %v951_v37 = vld [vmem:[%s2737_s6 + $0x20] sm:$0xff] }
 0x2d3   : > { %2020 = vpow2.f32 %v1244_v12  ;;  %1856 = vmatpush3.bf16.msra.mxu1 %v1853_v10  ;;  %v1418_v32 = vld [vmem:[%s2744_s13] sm:$0x3] }
 0x2d4   : > { %v2015_v15 = vpop.eup %2014  ;;  %v1857_v16 = vpack.c.bf16 %v861_v14, %v860_v13  ;;  %v1054_v13 = vld [vmem:[#allocation5] sm:$0x3]  ;;  %v2221_v14 = vmov 0.0|0.0  }
 0x2d5   : > { %v2017_v53 = vpop.eup %2016  ;;  %v862_v17 = vmul.f32 %v2015_v15, %v822_v41  ;;  %v1871_v41 = vpack.c.bf16 %v953_v38, %v951_v37 }
 0x2d6   : > { %1858 = vmatprep.subr.bf16.mxu1 %v1857_v16  ;;  %v863_v18 = vmul.f32 %v2017_v53, %v823_v43  ;;  %v955_v43 = vld [vmem:[%s2737_s6 + $0x40] sm:$0xff]  ;;  %v1335_v53 = vld [vmem:[%s2742_s11 + $0x8] sm:$0xff] }
 0x2d7   : > { %1860 = vmatpush3.bf16.msra.mxu1 %v1857_v16  ;;  %v1875_v47 = vpack.c.bf16 %v957_v44, %v955_v43  ;;  %v1260_v16 = vld [vmem:[#allocation8] sm:$0xf] }
 0x2d8   : > { %v1861_v52 = vpack.c.bf16 %v863_v18, %v862_v17  ;;  %v1337_v17 = vld [vmem:[%s2742_s11 + $0x18] sm:$0xff] }
 0x2d9   : > { %v1894_v18 = vpack.c.bf16 %v1337_v17, %v1335_v53 }
 0x2da   : > { %1862 = vmatprep.subr.bf16.mxu1 %v1861_v52 }
 0x2db   : > { %1864 = vmatpush3.bf16.msra.mxu1 %v1861_v52  ;;  %v1334_v52 = vld [vmem:[%s2742_s11] sm:$0xff] }
 0x2dc   : > { %v2019_v22 = vpop.eup %2018  ;;  %1866 = vmatprep.subr.bf16.mxu1 %v1865_v31 }
 0x2dd   : > { %v2021_v23 = vpop.eup %2020  ;;  %v2583_v24 = vmul.f32 %v2019_v22, %v1246_v19  ;;  %v1336_v19 = vld [vmem:[%s2742_s11 + $0x10] sm:$0xff] }
 0x2de   : > { %1809 = vmatmul.mubr.msk.f32.vlgmr.msra.gmra.mrb[0].mxu1 %vm759_vm2, %v865_v20  ;;  %v2586_v25 = vmul.f32 %v2021_v23, %v1247_v21  ;;  %v1896_v20 = vpack.c.bf16 %v1336_v19, %v1334_v52 }
 0x2df   : > { %v1250_v26 = vsel %vm605_vm0, %v2583_v24, 0.0  ;;  %1868 = vmatpush1.bf16.msra.mxu1 %v1867_v35  ;;  %1033 = vmatprep.mubr.f32.mxu1 %v2220_v54 }
 0x2e0   : > { %1251 = vadd.xlane.f32.xlu0 %v1250_v26  ;;  %v1253_v27 = vsel %vm605_vm0, %v2586_v25, 0.0  ;;  %1870 = vmatprep.subr.bf16.mxu1 %v1869_v36  ;;  %v1412_v26 = vld [vmem:[%s2743_s12] sm:$0xff] }
 0x2e1   : > { %1254 = vadd.xlane.f32.xlu1 %v1253_v27  ;;  %v1414_v27 = vcombine.high %v1412_v26, %v1412_v26 }
 0x2e3   : > { %1872 = vmatpush1.bf16.msra.mxu1 %v1871_v41 }
 0x2e4   : > { %1874 = vmatprep.subr.bf16.mxu1 %v1873_v42 }
 0x2e7   : > { %1876 = vmatpush1.bf16.msra.mxu1 %v1875_v47 }
 0x2e8   : > { %1878 = vmatprep.subr.bf16.mxu1 %v1877_v48 }
 0x2eb   : > { %1880 = vmatpush1.bf16.msra.mxu1 %v1879_v51 }
 0x36d   : > { %v1252_v57 = vpop.xlane.xlu0 %1251 }
 0x36e   : > { %v1255_v58 = vpop.xlane.xlu1 %1254  ;;  %2022 = vrcp.f32 %v1252_v57 }
 0x36f   : > { %2024 = vrcp.f32 %v1255_v58 }
 0x378   : > { %v2023_v2 = vpop.eup %2022 }
 0x379   : > { %v2025_v6 = vpop.eup %2024  ;;  %v1258_v11 = vmul.f32 %v2023_v2, %v2583_v24 }
 0x37a   : > { %v1259_v12 = vmul.f32 %v2025_v6, %v2586_v25 }
 0x37c   : > { %v1892_v15 = vpack.c.bf16 %v1259_v12, %v1258_v11 }
 0x3b1   : > { %v1810_v55 = vpop.f32.mrb[0].mxu1 }
 0x3b2   : > { %v938_v56 = vpop.f32.mrb[1].mxu1 }
 0x3b3   : > { %1706 = vmatmul.mubr.msk.f32.vlgmr.msra.gmra.mrb[2].mxu1 %vm759_vm2, %v938_v56 }
 0x3b4   : > { %1039 = vmatprep.mubr.f32.mxu1 %v2220_v54 }
 0x3b7   : > { %1707 = vmatmul.mubr.msk.f32.gmra.mrb[4].mxu1 %vm759_vm2, %v1810_v55 }
 0x3b8   : > { %1122 = vmatprep.mubr.f32.mxu1 %v2220_v54 }
 0x486   : > { %v1035_v59 = vpop.f32.mrb[2].mxu1 }
 0x487   : > { %v1037_v60 = vpop.f32.mrb[3].mxu1  ;;  %v1050_v3 = vmul.f32 %v1046_v61, %v1035_v59 }
 0x488   : > { %v1051_v7 = vmul.f32 %v1047_v63, %v1037_v60 }
 0x48a   : > { %v1041_v1 = vpop.f32.mrb[4].mxu1 }
 0x48b   : > { %v1052_v4 = vmul.f32 %v1048_v62, %v1041_v1  ;;  %v1043_v5 = vpop.f32.mrb[5].mxu1 }
 0x48c   : > { %v1053_v8 = vmul.f32 %v1049_v0, %v1043_v5 }
 0x48d   : > { %v1883_v9 = vpack.c.bf16 %v1052_v4, %v1050_v3 }
 0x48e   : > { %v1881_v10 = vpack.c.bf16 %v1053_v8, %v1051_v7 }
 0x490   : > { %1882 = vmatprep.subr.bf16.mxu1 %v1881_v10 }
 0x491   : > { %1884 = vmatpush1.bf16.msra.mxu1 %v1883_v9 }
 0x492   : > { %1891 = vmatprep.subr.bf16.mxu1 %v2221_v14 }
 0x494   : > { %1708 = vmatmul.mubr.msk.f32.vlgmr.msra.gmra.mrb[6].mxu1 %vm605_vm0, %v1054_v13 }
 0x495   : > { %1893 = vmatpush3.bf16.msra.mxu1 %v1892_v15  ;;  %1822 = vmatprep.mubr.msk.f32.mxu1 %vm2222_vm3, %v2220_v54 }
 0x496   : > { %1895 = vmatprep.subr.bf16.mxu1 %v1894_v18 }
 0x498   : > { %1823 = vmatmul.mubr.msk.f32.vlgmr.msra.gmra.mrb[8].mxu1 %vm605_vm0, %v1260_v16 }
 0x499   : > { %1405 = vmatprep.mubr.f32.mxu1 %v2220_v54  ;;  %1897 = vmatpush1.bf16.msra.mxu1 %v1896_v20 }
 0x567   : > { %v1124_v21 = vpop.f32.mrb[6].mxu1 }
 0x568   : > { %v1126_v22 = vpop.f32.mrb[7].mxu1 }
 0x569   : > { %v1131_v23 = vcombine.low %v1124_v21, %v1126_v22 }
 0x56b   : > { %1709 = vst.sshfl [vmem:[%s560_s29] sm:$0x33 pattern:$0x76325410] %v1131_v23  ;;  %v1330_v24 = vpop.f32.mrb[8].mxu1 }
 0x56c   : > { %1715 = vmatmul.mubr.msk.f32.vlgmr.msra.gmra.mrb[10].mxu1 %vm605_vm0, %v1330_v24  ;;  %v1824_v25 = vpop.f32.mrb[9].mxu1 }
 0x63f   : > { %v1407_v28 = vpop.f32.mrb[10].mxu1 }
 0x640   : > { %v1409_v29 = vpop.f32.mrb[11].mxu1  ;;  %v1416_v31 = vmul.f32 %v1412_v26, %v1407_v28 }
 0x641   : > { %v1417_v30 = vmul.f32 %v1414_v27, %v1409_v29 }
 0x643   : > { %1716 = vmatprep.subr.msk.mxu0 %vm1423_vm4, %v1417_v30 }
 0x644   : > { %1717 = vmatpush1.msk.msra.mxu0 %vm1423_vm4, %v1416_v31 }
 0x645   : > { %1718 = vmatmul.mubr.msk.f32.vlgmr.msra.gmra.mrb[10].mxu0 %vm1419_vm5, %v1418_v32 }
 0x718   : > { %v1496_v33 = vpop.f32.mrb[10].mxu0 }
 0x719   : > { %v1498_v34 = vpop.f32.mrb[11].mxu0 }
 0x71a   : > { %v1503_v35 = vcombine.low %v1496_v33, %v1498_v34 }
 0x71c   : > { %1729 = vst.sshfl [vmem:[%s560_s29 + $0x4] sm:$0x33 pattern:$0x76325410] %v1503_v35 }
 0x71d   : > { %2151 = shalt.err (!%p2148_p1)
}
 0x71e   : > { %s2152_s15 = scalar_lea.hbm %s2686_s16, 128  ;;  %s2156_s14 = scalar_lea.hbm %s2785_s8, 256 }
 0x71f   : > { %p2153_p0 = scmp.ne.s32.totalorder %s2686_s16, %s2152_s15  ;;  %p2157_p9 = scmp.lt.u32.totalorder %s2686_s16, %s2785_s8 }
 0x720   : > { %p2158_p12 = scmp.lt.u32.totalorder %s2156_s14, %s2152_s15  ;;  %p2160_p2 = scmp.lt.u32.totalorder %s2152_s15, %s2686_s16 }
 0x721   : > { %p2154_p6 = pnand %p2153_p0, %p2786_p3 }
 0x722   : > { %p2159_p10 = por %p2158_p12, %p2157_p9 }
 0x723   : > { %p2155_p5 = pneg %p2154_p6 }
 0x724   : > { %p2161_p4 = por %p2160_p2, %p2159_p10 }
 0x726   : > { %p2162_p7 = pnand %p2161_p4, %p2155_p5 }
 0x728   : > { %2165 = shalt.err (!%p2162_p7)
}
 0x729   : > { %s2224_s28 = smov 64   ;;  %s2225_s18 = smov 4  }
 0x72a   : > { %1914 = dma.vmem_to_hbm [thread:$0]  (%p2786_p3), %s2681_s20, 128, %s2686_s16, %s2690_s24, %s2224_s28, %s2224_s28, %s2225_s18  }
 0x72b PF: > { %s2787_s19 = sld [smem:[#allocation17_spill]]  ;;  %s2788_s26 = sld [smem:[#allocation15_spill]] }
 0x72c   : > { %s2789_s17 = sld [smem:[#allocation21_spill]] }
 0x731   : > { %p1941_p8 = scmp.ge.s32.totalorder %s2787_s19, 2  ;;  %s1543_s21 = sand.u32 1, %s2788_s26  }
 0x732   : > { %p2790_p11 = scmp.ne.s32.totalorder %s2789_s17, 0  ;;  %s1544_s27 = scalar_lea.sflag [#allocation4], %s1543_s21 }
 0x734   : > { %p1930_p13 = pnand %p1941_p8, %p2790_p11 }
 0x736   : > { %2195 = dma.done.wait (!%p1930_p13), %s1544_s27, 128  }
 0x737   : > { %2197 = vsyncadd (!%p1930_p13), %s1544_s27, 4294967168  ;;  %s2791_s16 = sld [smem:[#allocation18_spill]]  ;;  %s2792_s15 = sld [smem:[#allocation16_spill]] }
 0x738   : > { %s2793_s22 = sld [smem:[#allocation19_spill]]  ;;  %s2794_s29 = smov %s2204_s30 }
 0x73d   : > { %p27_p1 = scmp.ge.s32.totalorder %s2791_s16, 4   ;;  %s2795_s30 = smov %s2792_s15 }
 0x73e   : > { %s2796_s15 = smov %s2793_s22 }
 0x73f   :  { %29 = sbr.rel (!%p27_p1) target bundleno = 10 (0xa), region = 138 }
 0x746   :  { %1549 = vsyncpa [#allocation3], 1 }
 0x747   :  { %1551 = vsyncpa [#allocation3 + $0x1], 1 }
 0x748   :  { %1552 = vsyncpa [#allocation6], 1 }
 0x749   :  { %1553 = vsyncpa [#allocation9], 1 }
 0x74a   :  { %1554 = vsyncpa [#allocation4], 1 }
 0x74b   :  { %1556 = vsyncpa [#allocation4 + $0x1], 1 }

</bundles_post_ra>
